<compile_context>
chip_gen: v6e
topology: v6e:2x2x1
jax: 0.10.0
libtpu: 0.0.40
codegen_flags: <defaults>
</compile_context>

<pallas_src>
import jax
import jax.numpy as jnp
from jax.experimental import pallas as pl
from jax.experimental.pallas import tpu as pltpu

FC_DIM = 64
OUT_DIM = 10


def _linear_kernel(x_ref, w_ref, b_ref, o_ref):
    # One batch tile per grid step; weight / bias are resident across steps.
    x = x_ref[...]                      # (TB, FC_DIM)  streamed (bf16/f32)
    w = w_ref[...]                      # (FC_DIM, OUT_DIM) resident
    b = b_ref[...]                      # (1, OUT_DIM) resident, f32
    acc = jnp.dot(x, w, preferred_element_type=jnp.float32)   # MXU, f32 accum
    o_ref[...] = (acc + b.astype(jnp.float32)).astype(o_ref.dtype)


def _round_up(n, m):
    return ((n + m - 1) // m) * m


def _pick_tile_b(B, tile_b):
    """Choose the batch tile.

    Big enough to amortize the ~0.35us per-grid-step overhead; on large
    batches capped so the grid keeps >= ~4-8 steps (feeds both v7x
    TensorCores via the "parallel" axis); multiple of 16 when tiled so the
    bf16 block layout is sublane-legal (a full-dim single tile is always
    legal).
    """
    tb = min(tile_b, B)
    if B >= 4096:
        # Keep the grid long enough for megacore without dropping the tile
        # below 2048 rows (per-step-overhead amortization).
        tb = min(tb, max(2048, _round_up(pl.cdiv(B, 8), 16)))
    if tb >= B:
        return B
    return max(16, (tb // 16) * 16)


def mlp_out_forward(x, w_t, b, *, tile_b=8192, stream_dtype=jnp.bfloat16,
                    out_dtype=None):
    """y = x @ w_t + b.

    x: (B, FC_DIM), w_t: (FC_DIM, OUT_DIM), b: (OUT_DIM,).

    x and w_t are cast to `stream_dtype` at the call boundary (bf16 default)
    to halve the dominant HBM read; accumulation is f32 in-kernel and the
    result is stored as `out_dtype` (defaults to x.dtype).

    VMEM math (lane padding included): per buffer the x block is
    tb*128*isz(stream) bytes (64 -> 128 lanes) and the out block is
    tb*128*isz(out) bytes (10 -> 128 lanes); both are double-buffered.
    At tb=8192, bf16 x / f32 out, that is ~12 MiB -- inside every
    generation's scoped-VMEM budget (16 MiB v5e default, 32 MiB v6e/v7x).
    """
    B = x.shape[0]
    assert x.shape[1] == FC_DIM and w_t.shape == (FC_DIM, OUT_DIM)
    out_dtype = x.dtype if out_dtype is None else out_dtype

    tb = _pick_tile_b(B, tile_b)
    grid = (pl.cdiv(B, tb),)

    # Cast the streamed operands at the boundary (no-op if already that dtype).
    x_s = x.astype(stream_dtype)
    w_s = w_t.astype(stream_dtype)
    b2d = b.astype(jnp.float32).reshape(1, OUT_DIM)

    stream_isz = jnp.dtype(stream_dtype).itemsize
    out_isz = jnp.dtype(out_dtype).itemsize

    cost = pl.CostEstimate(
        flops=2 * B * FC_DIM * OUT_DIM,
        transcendentals=0,
        bytes_accessed=(
            B * FC_DIM * stream_isz                 # read x (dominant)
            + FC_DIM * OUT_DIM * stream_isz         # read W
            + OUT_DIM * 4                           # read b
            + B * OUT_DIM * out_isz                 # write y
        ),
    )

    # Real double-buffered VMEM need (with 128-lane padding of x and out),
    # plus headroom for the resident weight/bias and pipeline bookkeeping.
    vmem_needed = 2 * tb * 128 * (stream_isz + out_isz) + (2 << 20)
    vmem_limit = int(min(max(vmem_needed, 16 << 20), 48 << 20))

    return pl.pallas_call(
        _linear_kernel,
        out_shape=jax.ShapeDtypeStruct((B, OUT_DIM), out_dtype),
        grid=grid,
        in_specs=[
            pl.BlockSpec((tb, FC_DIM), lambda i: (i, 0)),       # streamed x tile
            pl.BlockSpec((FC_DIM, OUT_DIM), lambda i: (0, 0)),  # resident W
            pl.BlockSpec((1, OUT_DIM), lambda i: (0, 0)),       # resident bias
        ],
        out_specs=pl.BlockSpec((tb, OUT_DIM), lambda i: (i, 0)),
        compiler_params=pltpu.CompilerParams(
            dimension_semantics=("parallel",),   # shard batch tiles across TCs
            vmem_limit_bytes=vmem_limit,
        ),
        cost_estimate=cost,
    )(x_s, w_s, b2d)


def init_params(key):
    # Deterministic init mimicking nn.Linear default (uniform +/- 1/sqrt(fan_in)).
    k_w, k_b = jax.random.split(key)
    bound = 1.0 / jnp.sqrt(jnp.float32(FC_DIM))
    # torch stores weight as (out, in); keep that convention then transpose.
    w = jax.random.uniform(k_w, (OUT_DIM, FC_DIM), jnp.float32, -bound, bound)
    b = jax.random.uniform(k_b, (OUT_DIM,), jnp.float32, -bound, bound)
    return w.T, b  # (FC_DIM, OUT_DIM) pre-transposed weight, (OUT_DIM,) bias


if __name__ == "__main__":
    key = jax.random.PRNGKey(0)
    k_x, k_p, k_x2 = jax.random.split(key, 3)
    w_t, b = init_params(k_p)

    # Small-shape exactness check: f32 streaming path, single tile.
    batch = 8
    x = jax.random.normal(k_x, (batch, FC_DIM), jnp.float32)
    y = mlp_out_forward(x, w_t, b, stream_dtype=jnp.float32)
    jax.block_until_ready(y)
    y_ref = x @ w_t + b
    assert y.shape == (batch, OUT_DIM)
    assert jnp.allclose(y, y_ref, atol=1e-5, rtol=1e-5)

    # Tiled bf16-streaming path: multiple grid steps incl. a partial last tile.
    batch2 = 200
    x2 = jax.random.normal(k_x2, (batch2, FC_DIM), jnp.float32)
    y2 = mlp_out_forward(x2, w_t, b, tile_b=64)      # bf16 streaming by default
    jax.block_until_ready(y2)
    # Reference applies the same bf16 cast to the streamed operands.
    y2_ref = (x2.astype(jnp.bfloat16).astype(jnp.float32)
              @ w_t.astype(jnp.bfloat16).astype(jnp.float32) + b)
    assert y2.shape == (batch2, OUT_DIM)
    assert y2.dtype == x2.dtype
    assert jnp.allclose(y2, y2_ref, atol=2e-2, rtol=2e-2)

    print("KERNEL_OK")
</pallas_src>

<mosaic_0001>
module attributes {stable_mosaic.version = 11 : i64} {
  func.func @_linear_kernel(%arg0: i32, %arg1: memref<8x64xf32, #tpu.memory_space<vmem>>, %arg2: memref<64x10xf32, #tpu.memory_space<vmem>>, %arg3: memref<1x10xf32, #tpu.memory_space<vmem>>, %arg4: memref<8x10xf32, #tpu.memory_space<vmem>>) attributes {dimension_semantics = [#tpu.dimension_semantics<parallel>], iteration_bounds = array<i64: 1>, scalar_prefetch = 0 : i64, scratch_operands = 0 : i64, tpu.core_type = #tpu.core_type<tc>, window_params = [{transform_indices = @transform_0, window_bounds = array<i64: 8, 64>}, {pipeline_mode = #tpu.pipeline_mode<synchronous>, transform_indices = @transform_1, window_bounds = array<i64: 64, 10>}, {pipeline_mode = #tpu.pipeline_mode<synchronous>, transform_indices = @transform_2, window_bounds = array<i64: 1, 10>}, {transform_indices = @transform_3, window_bounds = array<i64: 8, 10>}]} {
    %c0 = arith.constant 0 : index
    %c0_0 = arith.constant 0 : index
    %0 = vector.load %arg1[%c0, %c0_0] : memref<8x64xf32, #tpu.memory_space<vmem>>, vector<8x64xf32>
    %c0_1 = arith.constant 0 : index
    %c0_2 = arith.constant 0 : index
    %1 = vector.load %arg2[%c0_1, %c0_2] : memref<64x10xf32, #tpu.memory_space<vmem>>, vector<64x10xf32>
    %c0_3 = arith.constant 0 : index
    %c0_4 = arith.constant 0 : index
    %2 = vector.load %arg3[%c0_3, %c0_4] : memref<1x10xf32, #tpu.memory_space<vmem>>, vector<1x10xf32>
    %cst = arith.constant dense<0.000000e+00> : vector<8x10xf32>
    %3 = tpu.matmul %0, %1, %cst {dimension_numbers = #tpu.dot_dimension_numbers<[1], [0], [0], [1], [0, 0, 1, 1], [], []>} : vector<8x64xf32>, vector<64x10xf32>, vector<8x10xf32> -> vector<8x10xf32>
    %4 = vector.broadcast %2 : vector<1x10xf32> to vector<8x10xf32>
    %5 = arith.addf %3, %4 : vector<8x10xf32>
    %c0_5 = arith.constant 0 : index
    %c0_6 = arith.constant 0 : index
    %6 = vector.load %arg4[%c0_5, %c0_6] : memref<8x10xf32, #tpu.memory_space<vmem>>, vector<8x10xf32>
    tpu.vector_store %arg4[%c0_5, %c0_6], %5 {strides = array<i32>} : memref<8x10xf32, #tpu.memory_space<vmem>>, vector<8x10xf32>,
    return
  }
  func.func @transform_0(%arg0: i32) -> (i32, i32) {
    %c0_i32 = arith.constant 0 : i32
    %c0_i32_0 = arith.constant 0 : i32
    return %arg0, %c0_i32 : i32, i32
  }
  func.func @transform_1(%arg0: i32) -> (i32, i32) {
    %c0_i32 = arith.constant 0 : i32
    %c0_i32_0 = arith.constant 0 : i32
    %c0_i32_1 = arith.constant 0 : i32
    return %c0_i32, %c0_i32_0 : i32, i32
  }
  func.func @transform_2(%arg0: i32) -> (i32, i32) {
    %c0_i32 = arith.constant 0 : i32
    %c0_i32_0 = arith.constant 0 : i32
    %c0_i32_1 = arith.constant 0 : i32
    return %c0_i32, %c0_i32_0 : i32, i32
  }
  func.func @transform_3(%arg0: i32) -> (i32, i32) {
    %c0_i32 = arith.constant 0 : i32
    %c0_i32_0 = arith.constant 0 : i32
    return %arg0, %c0_i32 : i32, i32
  }
}

</mosaic_0001>

<bundles_post_ra>
// kernel: tpu_custom_call.1
= control target key start
LH: loop header
LB: loop body
LE: loop exit
PB: predicated region body
PF: predicated region fallthrough
CT: control target
= control target key end

     0   :  { %v176_v1 = vmov 0.0   ;;  %vm177_vm0 = vmmov 0   ;;  %s232_s0 = inlined_call_operand.vmem [shape: f32[8,64], index: 0, kind: input, shape index: {}]   ;;  %s233_s1 = inlined_call_operand.vmem [shape: f32[64,10], index: 1, kind: input, shape index: {}]   ;;  %s234_s2 = inlined_call_operand.vmem [shape: f32[1,10], index: 2, kind: input, shape index: {}]   ;;  %s235_s3 = inlined_call_operand.hbm [shape: f32[8,10], index: 3, kind: output, shape index: {}]  }
   0x1   :  { %v23_v0 = vld [vmem:[%s233_s1 + $0x38] sm:$0xff]  ;;  %132 = vmatprep.subr.mxu0 %v176_v1  ;;  %v22_v2 = vld [vmem:[%s233_s1 + $0x30] sm:$0xff]  ;;  %148 = vmatprep.mubr.msk.f32.mxu0 %vm177_vm0, %v176_v1  ;;  %v21_v3 = vld [vmem:[%s233_s1 + $0x28] sm:$0xff] }
   0x2   :  { %133 = vmatpush3.msra.mxu0 %v23_v0 }
   0x3   :  { %134 = vmatprep.subr.mxu0 %v176_v1 }
   0x4   :  { %8 = vsyncpa [#allocation3], 0  ;;  %135 = vmatpush3.msra.mxu0 %v22_v2  ;;  %v20_v4 = vld [vmem:[%s233_s1 + $0x20] sm:$0xff]  ;;  %v19_v5 = vld [vmem:[%s233_s1 + $0x18] sm:$0xff]  ;;  %vm31_vm1 = vcmask 523264   ;;  %s178_s5 = smov [#allocation2]  }
   0x5   :  { %136 = vmatprep.subr.mxu0 %v176_v1  ;;  %v18_v6 = vld [vmem:[%s233_s1 + $0x10] sm:$0xff]  ;;  %v17_v7 = vld [vmem:[%s233_s1 + $0x8] sm:$0xff]  ;;  %v16_v8 = vld [vmem:[%s233_s1] sm:$0xff]  ;;  %s113_s6 = sshll.u32 %s178_s5, 4  ;;  %vm105_vm2 = vcmask 80896   ;;  %s114_s6 = int_to_ptr.vmem [resolvable:$true] %s113_s6 }
   0x6   :  { %137 = vmatpush3.msra.mxu0 %v21_v3  ;;  %v15_v9 = vld [vmem:[%s232_s0] sm:$0xff]  ;;  %s154_s1 = scalar_lea.vmem %s114_s6, 128  ;;  %p159_p1 = scmp.lt.s32.totalorder %s114_s6, %s114_s6 }
   0x7   :  { %138 = vmatprep.subr.mxu0 %v176_v1  ;;  %v121_v10 = vld [vmem:[%s234_s2] ss:$0 sm:$0xff]  ;;  %p155_p0 = scmp.ne.s32.totalorder %s114_s6, %s154_s1  ;;  %p160_p2 = scmp.lt.s32.totalorder %s154_s1, %s154_s1 }
   0x8   :  { %139 = vmatpush3.msra.mxu0 %v20_v4 }
   0x9   :  { %140 = vmatprep.subr.mxu0 %v176_v1  ;;  %p161_p3 = por %p160_p2, %p159_p1 }
   0xa   :  { %141 = vmatpush3.msra.mxu0 %v19_v5 }
   0xb   :  { %142 = vmatprep.subr.mxu0 %v176_v1  ;;  %p162_p4 = pnand %p161_p3, %p155_p0 }
   0xc   :  { %143 = vmatpush3.msra.mxu0 %v18_v6 }
   0xd   :  { %144 = vmatprep.subr.mxu0 %v176_v1 }
   0xe   :  { %145 = vmatpush3.msra.mxu0 %v17_v7 }
   0xf   :  { %146 = vmatprep.subr.mxu0 %v176_v1 }
  0x10   :  { %147 = vmatpush3.msra.mxu0 %v16_v8 }
  0x11   :  { %149 = vmatmul.mubr.msk.f32.vlgmr.msra.gmra.mxu0 %vm31_vm1, %v15_v9 }
  0xd1   :  { %v101_v11 = vpop.f32.mrf.mxu0 }
  0xd2   :  { %v102_v12 = vadd.f32 %v121_v10, %v101_v11 }
  0xd3   :  { %v150_v13 = vpop.f32.mrf.mxu0 }
  0xd4   :  { %106 = vst.msk [vmem:[#allocation2] sm:$0xff] %vm105_vm2, %v102_v12 }
  0xd5   :  { %165 = shalt.err (!%p162_p4)
}
  0xd6   :  { %116 = dma.vmem_to_hbm [thread:$0]  %s114_s6, 128, %s235_s3, [#allocation3]  }
  0xd7   :  { %174 = dma.done.wait [#allocation3], 128  }
  0xd8   :  { %175 = vsyncadd [#allocation3], 4294967168 }
  0xd9   :  { %120 = vsyncpa [#allocation3], 1 }

</bundles_post_ra>
